<compile_context>
chip_gen: v7x
topology: tpu7x:2x2x1
jax: 0.10.0
libtpu: 0.0.40
codegen_flags: <defaults>
</compile_context>

<pallas_src>
import functools

import jax
import jax.numpy as jnp
from jax import lax
from jax.experimental import pallas as pl
from jax.experimental.pallas import tpu as pltpu


def _round_up(v, m):
    return ((v + m - 1) // m) * m


def _ctxprop_kernel(bounds_ref, x_ref, wx_ref, gout_ref, o_ref):
    """out = x @ Wx^T + g_out[graph_id(node)], graph_id derived from ptr bounds."""
    tile = x_ref.shape[0]
    # Global node index of each row in this tile (grid offset + sublane iota).
    idx = pl.program_id(0) * tile + lax.broadcasted_iota(jnp.int32, (tile, 1), 0)
    # One-hot graph membership from the CSR boundaries (resident (2, G) block).
    lo = bounds_ref[0:1, :]                                        # (1, G)
    hi = bounds_ref[1:2, :]                                        # (1, G)
    onehot = jnp.logical_and(idx >= lo, idx < hi).astype(jnp.float32)  # (tile, G)
    # Gather per-graph context contribution (tiny K=G dot) + main x matmul.
    ctx_part = jnp.dot(onehot, gout_ref[...], preferred_element_type=jnp.float32)
    x_part = jnp.dot(x_ref[...], wx_ref[...], preferred_element_type=jnp.float32)
    o_ref[...] = (ctx_part + x_part).astype(o_ref.dtype)


def _context_propagation_pallas(bounds, x, wx_t, g_out, *, tile_n):
    """bounds: [2, G] int32, x: [N, Dg], wx_t: [Dg, C], g_out: [G, C]."""
    n, dg = x.shape
    g, c = g_out.shape

    itemsize = jnp.dtype(x.dtype).itemsize
    sublane = 8 * max(1, 4 // itemsize)          # 8 (f32) / 16 (bf16) / 32 (int8)

    # Big tiles amortize per-grid-step overhead; keep >= 2 grid steps when N
    # allows it so the "parallel" axis can shard across v7x's 2 TensorCores.
    tile_cap = _round_up(tile_n, sublane)
    if n > sublane:
        tile = min(tile_cap, _round_up(pl.cdiv(n, 2), sublane))
    else:
        tile = sublane
    grid = (pl.cdiv(n, tile),)

    # Explicit scoped-VMEM budget: 2x double-buffered streamed blocks (lane
    # padded to 128) + headroom for in-kernel f32 intermediates.  Needed so
    # large tiles compile on v5e (16 MiB default); kept well under v7x's 64 MiB.
    lane = 128
    blk_bytes = tile * (_round_up(dg, lane) + _round_up(c, lane)) * itemsize
    vmem_limit = int(min(max(2 * blk_bytes + (16 << 20), 32 << 20), 56 << 20))

    return pl.pallas_call(
        _ctxprop_kernel,
        out_shape=jax.ShapeDtypeStruct((n, c), x.dtype),
        grid_spec=pltpu.PrefetchScalarGridSpec(
            num_scalar_prefetch=0,
            grid=grid,
            in_specs=[
                pl.BlockSpec((2, g), lambda i: (0, 0)),       # graph boundaries (resident)
                pl.BlockSpec((tile, dg), lambda i: (i, 0)),   # x (streamed, double-buffered)
                pl.BlockSpec((dg, c), lambda i: (0, 0)),      # Wx^T              (resident)
                pl.BlockSpec((g, c), lambda i: (0, 0)),       # context@Wc^T + b  (resident)
            ],
            out_specs=pl.BlockSpec((tile, c), lambda i: (i, 0)),
        ),
        compiler_params=pltpu.CompilerParams(
            dimension_semantics=("parallel",),
            vmem_limit_bytes=vmem_limit,
        ),
    )(bounds, x, wx_t, g_out)


@functools.partial(jax.jit, static_argnames=("tile_n",))
def context_propagation(context, x, ptr, wc, bc, wx, *, tile_n=4096):
    """ContextPropagation.forward:
         out = Linear_c(repeat_interleave(context, diff(ptr))) + Linear_x(x)
    context: [G, Dc], x: [N, Dg], ptr: [G+1] int, wc: [C, Dc], bc: [C], wx: [C, Dg]
    (torch nn.Linear layouts).  Returns [N, C] (the new graph.x).
    """
    # Per-graph contribution, tiny [G, C]; the repeat_interleave gather happens
    # in-kernel via the ptr bounds, so no [N, Dc] array is ever materialized.
    g_out = (context @ wc.T + bc).astype(jnp.float32)
    # Nodes with index >= ptr[-1] (inconsistent ptr) simply get zero context.
    bounds = jnp.stack([ptr[:-1], ptr[1:]]).astype(jnp.int32)     # (2, G)
    return _context_propagation_pallas(bounds, x, wx.T, g_out, tile_n=tile_n)


if __name__ == "__main__":
    # Small synthetic problem consistent with the module's forward:
    #   2 graphs, 16 total nodes, context_input_dim=8, graph_input_dim=16, out=32
    num_graphs = 2
    context_input_dim = 8
    graph_input_dim = 16
    out_channels = 32

    key = jax.random.PRNGKey(0)
    k_ctx, k_x, k_wc, k_bc, k_wx, k_x2 = jax.random.split(key, 6)

    # Graph boundaries: graph 0 has 5 nodes, graph 1 has 11 nodes -> N = 16.
    ptr = jnp.array([0, 5, 16], dtype=jnp.int32)
    num_nodes = 16

    context = jax.random.normal(k_ctx, (num_graphs, context_input_dim), jnp.float32)
    x = jax.random.normal(k_x, (num_nodes, graph_input_dim), jnp.float32)

    # Deterministic parameters (nn.Linear shapes): W_c [C, Dc], b_c [C], W_x [C, Dg].
    wc = jax.random.normal(k_wc, (out_channels, context_input_dim), jnp.float32) * 0.1
    bc = jax.random.normal(k_bc, (out_channels,), jnp.float32) * 0.1
    wx = jax.random.normal(k_wx, (out_channels, graph_input_dim), jnp.float32) * 0.1

    out = jax.block_until_ready(context_propagation(context, x, ptr, wc, bc, wx))

    # Pure-JAX reference (same semantics as the PyTorch forward).
    ctx_rep = jnp.repeat(context, jnp.diff(ptr), axis=0, total_repeat_length=num_nodes)
    ref = ctx_rep @ wc.T + bc + x @ wx.T
    assert out.shape == (num_nodes, out_channels)
    assert jnp.allclose(out, ref, atol=1e-5, rtol=1e-5), "mismatch vs reference"

    # A non-tile-multiple N: exercises the partial (masked) last block and a
    # 2-step parallel grid.
    n_big = 1037
    ptr_big = jnp.array([0, 400, 1037], dtype=jnp.int32)
    x_big = jax.random.normal(k_x2, (n_big, graph_input_dim), jnp.float32)
    out_big = jax.block_until_ready(
        context_propagation(context, x_big, ptr_big, wc, bc, wx))
    ctx_big = jnp.repeat(context, jnp.diff(ptr_big), axis=0, total_repeat_length=n_big)
    ref_big = ctx_big @ wc.T + bc + x_big @ wx.T
    assert out_big.shape == (n_big, out_channels)
    assert jnp.allclose(out_big, ref_big, atol=1e-5, rtol=1e-5), "mismatch (big)"

    print("KERNEL_OK")
</pallas_src>

<mosaic_0001>
module attributes {stable_mosaic.version = 11 : i64} {
  func.func @_ctxprop_kernel(%arg0: i32, %arg1: memref<2x2xi32, #tpu.memory_space<vmem>>, %arg2: memref<8x16xf32, #tpu.memory_space<vmem>>, %arg3: memref<16x32xf32, #tpu.memory_space<vmem>>, %arg4: memref<2x32xf32, #tpu.memory_space<vmem>>, %arg5: memref<8x32xf32, #tpu.memory_space<vmem>>) attributes {dimension_semantics = [#tpu.dimension_semantics<parallel>], iteration_bounds = array<i64: 2>, scalar_prefetch = 0 : i64, scratch_operands = 0 : i64, tpu.core_type = #tpu.core_type<tc>, window_params = [{pipeline_mode = #tpu.pipeline_mode<synchronous>, transform_indices = @transform_0, window_bounds = array<i64: 2, 2>}, {transform_indices = @transform_1, window_bounds = array<i64: 8, 16>}, {pipeline_mode = #tpu.pipeline_mode<synchronous>, transform_indices = @transform_2, window_bounds = array<i64: 16, 32>}, {pipeline_mode = #tpu.pipeline_mode<synchronous>, transform_indices = @transform_3, window_bounds = array<i64: 2, 32>}, {transform_indices = @transform_4, window_bounds = array<i64: 8, 32>}]} {
    %c8_i32 = arith.constant 8 : i32
    %0 = arith.muli %arg0, %c8_i32 : i32
    %1 = tpu.iota {dimensions = array<i32: 0>} : vector<8x1xi32>
    %2 = vector.broadcast %0 : i32 to vector<8x1xi32>
    %3 = arith.addi %2, %1 : vector<8x1xi32>
    %c0 = arith.constant 0 : index
    %c0_0 = arith.constant 0 : index
    %4 = vector.load %arg1[%c0, %c0_0] : memref<2x2xi32, #tpu.memory_space<vmem>>, vector<1x2xi32>
    %c1 = arith.constant 1 : index
    %c0_1 = arith.constant 0 : index
    %5 = vector.load %arg1[%c1, %c0_1] : memref<2x2xi32, #tpu.memory_space<vmem>>, vector<1x2xi32>
    %6 = vector.broadcast %3 : vector<8x1xi32> to vector<8x2xi32>
    %7 = vector.broadcast %4 : vector<1x2xi32> to vector<8x2xi32>
    %8 = arith.cmpi sge, %6, %7 : vector<8x2xi32>
    %9 = vector.broadcast %3 : vector<8x1xi32> to vector<8x2xi32>
    %10 = vector.broadcast %5 : vector<1x2xi32> to vector<8x2xi32>
    %11 = arith.cmpi slt, %9, %10 : vector<8x2xi32>
    %12 = arith.andi %8, %11 : vector<8x2xi1>
    %13 = arith.extui %12 : vector<8x2xi1> to vector<8x2xi32>
    %14 = arith.sitofp %13 : vector<8x2xi32> to vector<8x2xf32>
    %c0_2 = arith.constant 0 : index
    %c0_3 = arith.constant 0 : index
    %15 = vector.load %arg4[%c0_2, %c0_3] : memref<2x32xf32, #tpu.memory_space<vmem>>, vector<2x32xf32>
    %cst = arith.constant dense<0.000000e+00> : vector<8x32xf32>
    %16 = tpu.matmul %14, %15, %cst {dimension_numbers = #tpu.dot_dimension_numbers<[1], [0], [0], [1], [0, 0, 1, 1], [], []>} : vector<8x2xf32>, vector<2x32xf32>, vector<8x32xf32> -> vector<8x32xf32>
    %c0_4 = arith.constant 0 : index
    %c0_5 = arith.constant 0 : index
    %17 = vector.load %arg2[%c0_4, %c0_5] : memref<8x16xf32, #tpu.memory_space<vmem>>, vector<8x16xf32>
    %c0_6 = arith.constant 0 : index
    %c0_7 = arith.constant 0 : index
    %18 = vector.load %arg3[%c0_6, %c0_7] : memref<16x32xf32, #tpu.memory_space<vmem>>, vector<16x32xf32>
    %cst_8 = arith.constant dense<0.000000e+00> : vector<8x32xf32>
    %19 = tpu.matmul %17, %18, %cst_8 {dimension_numbers = #tpu.dot_dimension_numbers<[1], [0], [0], [1], [0, 0, 1, 1], [], []>} : vector<8x16xf32>, vector<16x32xf32>, vector<8x32xf32> -> vector<8x32xf32>
    %20 = arith.addf %16, %19 : vector<8x32xf32>
    %c0_9 = arith.constant 0 : index
    %c0_10 = arith.constant 0 : index
    %21 = vector.load %arg5[%c0_9, %c0_10] : memref<8x32xf32, #tpu.memory_space<vmem>>, vector<8x32xf32>
    tpu.vector_store %arg5[%c0_9, %c0_10], %20 {strides = array<i32>} : memref<8x32xf32, #tpu.memory_space<vmem>>, vector<8x32xf32>,
    return
  }
  func.func @transform_0(%arg0: i32) -> (i32, i32) {
    %c0_i32 = arith.constant 0 : i32
    %c0_i32_0 = arith.constant 0 : i32
    %c0_i32_1 = arith.constant 0 : i32
    return %c0_i32, %c0_i32_0 : i32, i32
  }
  func.func @transform_1(%arg0: i32) -> (i32, i32) {
    %c0_i32 = arith.constant 0 : i32
    %c0_i32_0 = arith.constant 0 : i32
    return %arg0, %c0_i32 : i32, i32
  }
  func.func @transform_2(%arg0: i32) -> (i32, i32) {
    %c0_i32 = arith.constant 0 : i32
    %c0_i32_0 = arith.constant 0 : i32
    %c0_i32_1 = arith.constant 0 : i32
    return %c0_i32, %c0_i32_0 : i32, i32
  }
  func.func @transform_3(%arg0: i32) -> (i32, i32) {
    %c0_i32 = arith.constant 0 : i32
    %c0_i32_0 = arith.constant 0 : i32
    %c0_i32_1 = arith.constant 0 : i32
    return %c0_i32, %c0_i32_0 : i32, i32
  }
  func.func @transform_4(%arg0: i32) -> (i32, i32) {
    %c0_i32 = arith.constant 0 : i32
    %c0_i32_0 = arith.constant 0 : i32
    return %arg0, %c0_i32 : i32, i32
  }
}

</mosaic_0001>

<bundles_post_ra>
// kernel: context_propagation.1
= control target key start
LH: loop header
LB: loop body
LE: loop exit
PB: predicated region body
PF: predicated region fallthrough
CT: control target
= control target key end

     0   :  { %9 = vsyncpa [#allocation3], 0  ;;  %s733_s0 = inlined_call_operand.vmem [shape: s32[2,2], index: 0, kind: input, shape index: {}]   ;;  %s734_s1 = inlined_call_operand.vmem [shape: f32[16,16], index: 1, kind: input, shape index: {}]   ;;  %s735_s2 = inlined_call_operand.vmem [shape: f32[16,32], index: 2, kind: input, shape index: {}]   ;;  %s736_s3 = inlined_call_operand.vmem [shape: f32[2,32], index: 3, kind: input, shape index: {}]   ;;  %s737_s4 = inlined_call_operand.hbm [shape: f32[16,32], index: 4, kind: output, shape index: {}]  }
   0x1   :  { %11 = vsyncpa [#allocation3 + $0x1], 0  ;;  %s617_s15 = smov 0   ;;  %s619_s16 = smov 0  }
   0x2   :  { %s621_s17 = smov 0   ;;  %s623_s18 = smov 0  }
   0x3 LB: > { %s638_s19 = sadd.s32 4294967295, %s586_s18   ;;  %s444_s20 = sadd.s32 4294967294, %s586_s18   ;;  %s586_s18 = sphi %s623_s18, %s743_s18   ;;  %s582_s17 = sphi %s621_s17, %s742_s17   ;;  %s578_s16 = sphi %s619_s16, %s741_s16   ;;  %s574_s15 = sphi %s617_s15, %s740_s15  }
   0x4   : > { %s642_s21 = sadd.s32 1, %s586_s18   ;;  %s113_s22 = sadd.s32 1, %s582_s17 }
   0x5   : > { %s110_s23 = ssub.s32 %s586_s18, %s642_s21  ;;  %p123_p0 = scmp.ne.s32.totalorder %s582_s17, %s578_s16 }
   0x6   : > { %p111_p1 = scmp.eq.s32.totalorder %s110_s23, 0  ;;  %p124_p2 = scmp.eq.s32.totalorder %s638_s19, 1 }
   0x7   : > { %p129_p3 = scmp.ne.s32.totalorder %s578_s16, %s574_s15  ;;  %p130_p4 = scmp.eq.s32.totalorder %s444_s20, 1 }
   0x8   : > { %s653_s24 = scalar_select %p111_p1, %s582_s17, %s113_s22  }
   0x9   : > { %p655_p5 = por %p124_p2, %p123_p0  ;;  %p659_p6 = por %p130_p4, %p129_p3 }
   0xa   : > { %p447_p7 = scmp.ge.s32.totalorder %s586_s18, 1  ;;  %p164_p8 = scmp.lt.s32.totalorder %s586_s18, 3 }
   0xc   : > { %p165_p9 = pnand %p447_p7, %p164_p8 }
   0xd   : > { %v215_v0 = vld [vmem:[%s735_s2] sm:$0xff] (!%p165_p9)  ;;  %v216_v1 = vld [vmem:[%s735_s2 + $0x8] sm:$0xff] (!%p165_p9)  ;;  %p189_p10 = scmp.lt.s32.totalorder (!%p165_p9), %s638_s19, 1  ;;  %v194_v2 = vlaneseq (!%p165_p9)  ;;  %v588_v3 = vmov (!%p165_p9), 0.0|0.0   ;;  %vm589_vm0 = vmmov (!%p165_p9), 0   ;;  %v590_v5 = vmov (!%p165_p9), 0.0  }
   0xe   : > { %168 = sbr.rel (%p165_p9) target bundleno = 254 (0xfe), region = 36  ;;  %478 = vmatprep.subr.bf16.mxu1 (!%p165_p9), %v588_v3  ;;  %v479_v4 = vpack.c.bf16 (!%p165_p9), %v216_v1, %v215_v0  ;;  %470 = vmatprep.mubr.msk.f32.mxu1 (!%p165_p9), %vm589_vm0, %v590_v5  ;;  %v213_v6 = vld [vmem:[%s736_s3] sm:$0x3] (!%p165_p9)  ;;  %vm295_vm1 = vcmask (!%p165_p9), 1041408   ;;  %s450_s7 = sshll.u32 (!%p165_p9), %s638_s19, 3  ;;  %vm217_vm2 = vcmask (!%p165_p9), 130048  }
   0xf   : > { %473 = vmatprep.subr.mxu0 (!%p165_p9), %v590_v5  ;;  %475 = vmatprep.mubr.msk.f32.mxu0 (!%p165_p9), %vm589_vm0, %v590_v5  ;;  %v195_v7 = vshrl.u32 (!%p165_p9), %v194_v2, 7  ;;  %v196_v8 = vstv (!%p165_p9), %s450_s7  ;;  %v451_v9 = vld [vmem:[%s733_s0] ss:$0 sm:$0xff] (!%p165_p9)  ;;  %v452_v10 = vld [vmem:[%s733_s0 + $0x1] ss:$0 sm:$0xff] (!%p165_p9)  ;;  %vm291_vm5 = vcmask (!%p165_p9), 15360  }
  0x10   : > { %480 = vmatpush3.bf16.msra.mxu1 (!%p165_p9), %v479_v4  ;;  %474 = vmatpush3.msk.msra.mxu0 (!%p165_p9), %vm295_vm1, %v213_v6  ;;  %s186_s23 = sand.u32 (!%p165_p9), 1, %s578_s16   ;;  %s458_s28 = sshll.u32 (!%p165_p9), %s638_s19, 7  ;;  %vm369_vm7 = vcmask (!%p165_p9), 261120  }
  0x11   : > { %v197_v11 = vadd.s32 (!%p165_p9), %v196_v8, %v195_v7  ;;  %s448_s27 = sshll.u32 (!%p165_p9), %s186_s23, 3  ;;  %s691_s7 = scalar_lea.hbm (!%p165_p9), %s737_s4, %s458_s28 }
  0x12   : > { %s188_s29 = scalar_lea.vmem (!%p165_p9), [#allocation2], %s448_s27  ;;  %s591_s9 = smov (!%p165_p9), [#allocation2]  }
  0x13   : > { %vm204_vm3 = vcmp.ge.s32.totalorder (!%p165_p9), %v197_v11, %v451_v9  ;;  %vm209_vm4 = vcmp.lt.s32.totalorder (!%p165_p9), %v197_v11, %v452_v10  ;;  %s385_s30 = sshll.u32 (!%p165_p9), %s188_s29, 4  ;;  %s528_s10 = sshll.u32 (!%p165_p9), %s591_s9, 4  ;;  %s693_s30 = int_to_ptr.vmem [resolvable:$true] %s385_s30  ;;  %s529_s10 = int_to_ptr.vmem [resolvable:$false] %s528_s10 }
  0x14   : > { %vm210_vm6 = vmand (!%p165_p9), %vm204_vm3, %vm209_vm4  ;;  %s530_s11 = scalar_lea.vmem (!%p165_p9), %s529_s10, 256  ;;  %p531_p0 = scmp.lt.s32.totalorder (!%p165_p9), %s693_s30, %s529_s10 }
  0x15   : > { %s190_s8 = scalar_select %p189_p10, %s638_s19, 1  ;;  %v453_v13 = vsel %vm210_vm6, 1.0, %v590_v5 }
  0x16   : > { %476 = vmatmul.mubr.msk.f32.vlgmr.msra.gmra.mrb[0].mxu0 %vm291_vm5, %v453_v13  ;;  %s524_s19 = scalar_lea.vmem %s693_s30, 128 }
  0x17   : > { %s449_s13 = sshll.u32 %s190_s8, 3  ;;  %s372_s8 = scalar_lea.sflag [#allocation3], %s186_s23 }
  0x18   : > { %s192_s22 = scalar_lea.vmem %s734_s1, %s449_s13  ;;  %p525_p11 = scmp.ne.s32.totalorder %s693_s30, %s524_s19 }
  0x19   : > { %v214_v12 = vld [vmem:[%s192_s22] sm:$0xff]  ;;  %p532_p1 = scmp.lt.s32.totalorder %s530_s11, %s524_s19 }
  0x1a   : > { %471 = vmatmul.mubr.msk.f32.vlgmr.msra.gmra.mrb[0].mxu1 %vm217_vm2, %v214_v12  ;;  %p526_p12 = pnand %p525_p11, %p655_p5 }
  0x1b   : > { %p533_p2 = por %p532_p1, %p531_p0 }
  0x1c   : > { %p527_p13 = pneg %p526_p12 }
  0x1e   : > { %p534_p3 = pnand %p533_p2, %p527_p13 }
  0xe9   : > { %v365_v16 = vpop.f32.mrb[0].mxu0 }
  0xea   : > { %v477_v18 = vpop.f32.mrb[1].mxu0 }
  0xed   : > { %v287_v14 = vpop.f32.mrb[0].mxu1 }
  0xee   : > { %v472_v15 = vpop.f32.mrb[1].mxu1  ;;  %v366_v17 = vadd.f32 %v365_v16, %v287_v14 }
  0xf0   : > { %370 = vst.msk [vmem:[%s188_s29] sm:$0xff] %vm369_vm7, %v366_v17 }
  0xf1   : > { %537 = shalt.err (!%p534_p3)
}
  0xf2   : > { %s538_s12 = scalar_lea.hbm %s691_s7, 128  ;;  %s542_s20 = scalar_lea.hbm %s737_s4, 256 }
  0xf3   : > { %p539_p4 = scmp.ne.s32.totalorder %s691_s7, %s538_s12  ;;  %p543_p9 = scmp.lt.u32.totalorder %s691_s7, %s737_s4 }
  0xf4   : > { %p544_p10 = scmp.lt.u32.totalorder %s542_s20, %s538_s12  ;;  %p546_p12 = scmp.lt.u32.totalorder %s538_s12, %s691_s7 }
  0xf5   : > { %p540_p7 = pnand %p539_p4, %p655_p5 }
  0xf6   : > { %p545_p11 = por %p544_p10, %p543_p9 }
  0xf7   : > { %p541_p8 = pneg %p540_p7 }
  0xf8   : > { %p547_p13 = por %p546_p12, %p545_p11 }
  0xfa   : > { %p548_p0 = pnand %p547_p13, %p541_p8 }
  0xfc   : > { %551 = shalt.err (!%p548_p0)
}
  0xfd   : > { %482 = dma.vmem_to_hbm [thread:$0]  (%p655_p5), %s693_s30, 128, %s691_s7, %s372_s8  }
  0xfe PF: > { %p488_p1 = scmp.ge.s32.totalorder %s586_s18, 2  ;;  %s397_s27 = sand.u32 1, %s574_s15  }
  0xff   : > { %s398_s28 = scalar_lea.sflag [#allocation3], %s397_s27 }
 0x100   : > { %p485_p2 = pnand %p488_p1, %p659_p6 }
 0x102   : > { %569 = dma.done.wait (!%p485_p2), %s398_s28, 128  }
 0x103   : > { %571 = vsyncadd (!%p485_p2), %s398_s28, 4294967168  ;;  %p14_p3 = scmp.ge.s32.totalorder %s642_s21, 4   ;;  %s740_s15 = smov %s578_s16 }
 0x104   : > { %s741_s16 = smov %s582_s17  ;;  %s742_s17 = smov %s653_s24 }
 0x105   : > { %s743_s18 = smov %s642_s21  ;;  %16 = sbr.rel (!%p14_p3) target bundleno = 3 (0x3), region = 71 }
 0x10c   :  { %403 = vsyncpa [#allocation3], 1 }
 0x10d   :  { %405 = vsyncpa [#allocation3 + $0x1], 1 }

</bundles_post_ra>
